<compile_context>
chip_gen: v7x
topology: tpu7x:2x2x1
jax: 0.10.0
libtpu: 0.0.40
codegen_flags: <defaults>
</compile_context>

<pallas_src>
import functools

import jax
import jax.numpy as jnp
import numpy as np
from jax.experimental import pallas as pl
from jax.experimental.pallas import tpu as pltpu


def _round_up(x, m):
    return (x + m - 1) // m * m


def _residual_block_kernel(x_ref, wg_ref, bg_ref, wo_ref, bo_ref, y_ref, *,
                           kernel_size, dilation, pad, t_tile, c_gate, c_res):
    """One (batch, time-tile) grid step.

    x_ref : (1, 1, T_halo, C_res)   overlapping time window (halo = 2*pad rows)
    wg_ref: (K*C_res, 2*C_gate)     fused [tanh | gate] conv weights, all taps
    bg_ref: (1, 2*C_gate)           fused [tanh | gate] bias (f32)
    wo_ref: (C_gate, C_out_pad)     fused [out | skip] 1x1 weights (lane padded)
    bo_ref: (1, C_out_pad)          fused [out | skip] bias (f32, lane padded)
    y_ref : (1, t_tile, C_out_pad)  combined [out | skip | zero-pad] output slab
    """
    xp = x_ref[0, 0]                                       # (T_halo, C_res)

    # Concatenate all K dilated taps along lanes -> one wide matmul.  The
    # contraction depth becomes K*C_res (one MXU push instead of 2K tiny ones).
    taps = [xp[k * dilation:k * dilation + t_tile, :] for k in range(kernel_size)]
    x_cat = taps[0] if kernel_size == 1 else jnp.concatenate(taps, axis=-1)

    pre = jnp.dot(x_cat, wg_ref[...], preferred_element_type=jnp.float32)
    pre = pre + bg_ref[...]                                # (t_tile, 2*C_gate) f32

    # Gating runs in f32 on the EUP/VPU; only MXU operands use the (possibly
    # bf16) compute dtype.  (This is the architecture-floor transcendental cost.)
    gated = jnp.tanh(pre[:, :c_gate]) * jax.nn.sigmoid(pre[:, c_gate:])

    # Fused 1x1 out+skip conv; output slab is lane-dense (C_out_pad % 128 == 0),
    # so stores are unmasked full-width vst.
    y = jnp.dot(gated.astype(wo_ref.dtype), wo_ref[...],
                preferred_element_type=jnp.float32) + bo_ref[...]

    # Residual add into the first c_res lanes (the "out" half of the slab).
    res = xp[pad:pad + t_tile, :].astype(jnp.float32)      # (t_tile, C_res)
    c_out_pad = y.shape[-1]
    res_full = jnp.concatenate(
        [res, jnp.zeros((t_tile, c_out_pad - c_res), jnp.float32)], axis=-1)

    y_ref[0] = (y + res_full).astype(y_ref.dtype)


def residual_conv1d(x_nct, params, *, kernel_size, dilation=1, t_tile=None,
                    compute_dtype=jnp.bfloat16):
    """WaveNet ResidualConv1d forward (eval mode).

    x_nct: (B, C_res, T) float32 in PyTorch NCT layout.
    Returns (out_nct, skip_nct) as float32 in NCT layout.
    """
    # PyTorch default padding (K-1)//2*dilation only preserves length for odd K.
    assert kernel_size % 2 == 1, "odd kernel_size required ('same'-style padding)"
    B, C_res, T = x_nct.shape
    pad = (kernel_size - 1) // 2 * dilation

    w_tanh, b_tanh, w_gate, b_gate, w_out, b_out, w_skip, b_skip = params
    C_gate = w_tanh.shape[2]
    C_skip = w_skip.shape[1]
    C_out = C_res + C_skip
    C_out_pad = _round_up(C_out, 128)        # lane-dense combined output slab

    if t_tile is None:
        t_tile = max(8, min(512, _round_up(T, 8)))
    assert t_tile % 8 == 0
    T_round = _round_up(T, t_tile)
    nT = T_round // t_tile
    T_halo = t_tile + 2 * pad

    # ---- weight packing (tiny, done once per call) -------------------------
    # tanh & gate convs fused along the output dim, all taps flattened into the
    # contraction dim: (K, C_res, C_gate)x2 -> (K*C_res, 2*C_gate).
    w_cat = (jnp.concatenate([w_tanh, w_gate], axis=-1)
             .reshape(kernel_size * C_res, 2 * C_gate).astype(compute_dtype))
    b_cat = jnp.concatenate([b_tanh, b_gate], axis=-1).astype(jnp.float32)
    # 1x1 out & skip convs fused and zero-padded to a multiple of 128 lanes.
    w_os = jnp.pad(jnp.concatenate([w_out, w_skip], axis=-1),
                   ((0, 0), (0, C_out_pad - C_out))).astype(compute_dtype)
    b_os = jnp.pad(jnp.concatenate([b_out, b_skip], axis=-1),
                   ((0, 0), (0, C_out_pad - C_out))).astype(jnp.float32)

    # ---- activation layout glue ---------------------------------------------
    # NCT -> NTC, zero-pad time, and cut overlapping halo windows so every grid
    # step gets a self-contained (T_halo, C_res) tile.  transpose + pad +
    # windowing fuse into a single XLA pass over the activations; halo
    # duplication is only 2*pad rows per tile.
    x_ntc = jnp.transpose(x_nct, (0, 2, 1))
    x_pad = jnp.pad(x_ntc, ((0, 0), (pad, pad + (T_round - T)), (0, 0))
                    ).astype(compute_dtype)
    patches = jnp.stack(
        [x_pad[:, t * t_tile:t * t_tile + T_halo, :] for t in range(nT)],
        axis=1)                                         # (B, nT, T_halo, C_res)

    kernel = functools.partial(
        _residual_block_kernel, kernel_size=kernel_size, dilation=dilation,
        pad=pad, t_tile=t_tile, c_gate=C_gate, c_res=C_res)

    # Weights/biases use a constant index_map -> fetched once, kept resident.
    const = lambda shape: pl.BlockSpec(shape, lambda b, t: (0,) * len(shape))

    y = pl.pallas_call(
        kernel,
        out_shape=jax.ShapeDtypeStruct((B, T_round, C_out_pad), jnp.float32),
        grid_spec=pltpu.PrefetchScalarGridSpec(
            num_scalar_prefetch=0,
            grid=(B, nT),
            in_specs=[
                pl.BlockSpec((1, 1, T_halo, C_res), lambda b, t: (b, t, 0, 0)),
                const((kernel_size * C_res, 2 * C_gate)),   # w_cat
                const((1, 2 * C_gate)),                     # b_cat
                const((C_gate, C_out_pad)),                 # w_os
                const((1, C_out_pad)),                      # b_os
            ],
            out_specs=pl.BlockSpec((1, t_tile, C_out_pad),
                                   lambda b, t: (b, t, 0)),
        ),
        compiler_params=pltpu.CompilerParams(
            # Every (batch, time-tile) step is independent -> both axes can be
            # sharded across TensorCores (2 TCs on v7x).
            dimension_semantics=("parallel", "parallel")),
    )(patches, w_cat, b_cat, w_os, b_os)

    out_ntc = y[:, :T, :C_res]                 # residual already added in-kernel
    skip_ntc = y[:, :T, C_res:C_out]
    return jnp.transpose(out_ntc, (0, 2, 1)), jnp.transpose(skip_ntc, (0, 2, 1))


def _reference(x_nct, params, *, kernel_size, dilation=1):
    """Plain-JAX reference mirroring the PyTorch forward (eval mode)."""
    w_tanh, b_tanh, w_gate, b_gate, w_out, b_out, w_skip, b_skip = params
    pad = (kernel_size - 1) // 2 * dilation

    def conv1d(x, w_kio, b):  # x: (B,C_in,T), w_kio: (K,C_in,C_out)
        w_oik = jnp.transpose(w_kio, (2, 1, 0))        # (C_out, C_in, K)
        y = jax.lax.conv_general_dilated(
            x, w_oik, window_strides=(1,), padding=[(pad, pad)],
            rhs_dilation=(dilation,),
            dimension_numbers=("NCH", "OIH", "NCH"))
        return y + b.reshape(1, -1, 1)

    tanhx = conv1d(x_nct, w_tanh, b_tanh)
    gatex = conv1d(x_nct, w_gate, b_gate)
    g = jnp.tanh(tanhx) * jax.nn.sigmoid(gatex)        # (B, C_gate, T)
    s = jnp.einsum("bct,cs->bst", g, w_skip) + b_skip.reshape(1, -1, 1)
    o = jnp.einsum("bct,cr->brt", g, w_out) + b_out.reshape(1, -1, 1)
    return o + x_nct, s


def init_params(key, residual_channels, gate_channels, kernel_size,
                skip_out_channels):
    ks = jax.random.split(key, 8)

    def u(k, shape, fan_in):
        bound = 1.0 / np.sqrt(fan_in)
        return jax.random.uniform(k, shape, jnp.float32, -bound, bound)

    fan_conv = residual_channels * kernel_size
    w_tanh = u(ks[0], (kernel_size, residual_channels, gate_channels), fan_conv)
    b_tanh = u(ks[1], (1, gate_channels), fan_conv)
    w_gate = u(ks[2], (kernel_size, residual_channels, gate_channels), fan_conv)
    b_gate = u(ks[3], (1, gate_channels), fan_conv)
    w_out = u(ks[4], (gate_channels, residual_channels), gate_channels)
    b_out = u(ks[5], (1, residual_channels), gate_channels)
    w_skip = u(ks[6], (gate_channels, skip_out_channels), gate_channels)
    b_skip = u(ks[7], (1, skip_out_channels), gate_channels)
    return (w_tanh, b_tanh, w_gate, b_gate, w_out, b_out, w_skip, b_skip)


if __name__ == "__main__":
    B, C_res, C_gate, C_skip, T = 2, 8, 16, 8, 16
    kernel_size, dilation = 3, 1

    key = jax.random.PRNGKey(0)
    kx, kp = jax.random.split(key)
    x = jax.random.normal(kx, (B, C_res, T), jnp.float32)   # B x C x T
    params = init_params(kp, C_res, C_gate, kernel_size, C_skip)

    ref_out, ref_skip = _reference(x, params, kernel_size=kernel_size,
                                   dilation=dilation)

    # f32 compute path (tight tolerance), time tiled so the grid is (B, nT=2).
    out, skip = residual_conv1d(x, params, kernel_size=kernel_size,
                                dilation=dilation, t_tile=8,
                                compute_dtype=jnp.float32)
    out, skip = jax.block_until_ready((out, skip))
    np.testing.assert_allclose(np.asarray(out), np.asarray(ref_out),
                               rtol=1e-5, atol=1e-5)
    np.testing.assert_allclose(np.asarray(skip), np.asarray(ref_skip),
                               rtol=1e-5, atol=1e-5)

    # bf16 MXU-operand path (default; v6e/v7x) with f32 accumulation/gating.
    out_bf, skip_bf = residual_conv1d(x, params, kernel_size=kernel_size,
                                      dilation=dilation, t_tile=8,
                                      compute_dtype=jnp.bfloat16)
    out_bf, skip_bf = jax.block_until_ready((out_bf, skip_bf))
    np.testing.assert_allclose(np.asarray(out_bf), np.asarray(ref_out),
                               rtol=5e-2, atol=5e-2)
    np.testing.assert_allclose(np.asarray(skip_bf), np.asarray(ref_skip),
                               rtol=5e-2, atol=5e-2)

    print("KERNEL_OK")
</pallas_src>

<mosaic_0001>
module attributes {stable_mosaic.version = 11 : i64} {
  func.func @_residual_block_kernel(%arg0: i32, %arg1: i32, %arg2: memref<1x1x10x8xf32, #tpu.memory_space<vmem>>, %arg3: memref<24x32xf32, #tpu.memory_space<vmem>>, %arg4: memref<1x32xf32, #tpu.memory_space<vmem>>, %arg5: memref<16x128xf32, #tpu.memory_space<vmem>>, %arg6: memref<1x128xf32, #tpu.memory_space<vmem>>, %arg7: memref<1x8x128xf32, #tpu.memory_space<vmem>>) attributes {dimension_semantics = [#tpu.dimension_semantics<parallel>, #tpu.dimension_semantics<parallel>], iteration_bounds = array<i64: 2, 2>, scalar_prefetch = 0 : i64, scratch_operands = 0 : i64, tpu.core_type = #tpu.core_type<tc>, window_params = [{transform_indices = @transform_0, window_bounds = array<i64: 1, 1, 10, 8>}, {pipeline_mode = #tpu.pipeline_mode<synchronous>, transform_indices = @transform_1, window_bounds = array<i64: 24, 32>}, {pipeline_mode = #tpu.pipeline_mode<synchronous>, transform_indices = @transform_2, window_bounds = array<i64: 1, 32>}, {pipeline_mode = #tpu.pipeline_mode<synchronous>, transform_indices = @transform_3, window_bounds = array<i64: 16, 128>}, {pipeline_mode = #tpu.pipeline_mode<synchronous>, transform_indices = @transform_4, window_bounds = array<i64: 1, 128>}, {transform_indices = @transform_5, window_bounds = array<i64: 1, 8, 128>}]} {
    %c0 = arith.constant 0 : index
    %c0_0 = arith.constant 0 : index
    %c0_1 = arith.constant 0 : index
    %c0_2 = arith.constant 0 : index
    %0 = vector.load %arg2[%c0, %c0_0, %c0_1, %c0_2] : memref<1x1x10x8xf32, #tpu.memory_space<vmem>>, vector<1x1x10x8xf32>
    %1 = vector.shape_cast %0 : vector<1x1x10x8xf32> to vector<10x8xf32>
    %2 = vector.extract_strided_slice %1 {offsets = [0, 0], sizes = [8, 8], strides = [1, 1]} : vector<10x8xf32> to vector<8x8xf32>
    %3 = vector.extract_strided_slice %1 {offsets = [1, 0], sizes = [8, 8], strides = [1, 1]} : vector<10x8xf32> to vector<8x8xf32>
    %4 = vector.extract_strided_slice %1 {offsets = [2, 0], sizes = [8, 8], strides = [1, 1]} : vector<10x8xf32> to vector<8x8xf32>
    %5 = tpu.concatenate %2, %3, %4 in 1 : vector<8x8xf32>, vector<8x8xf32>, vector<8x8xf32> -> vector<8x24xf32>
    %c0_3 = arith.constant 0 : index
    %c0_4 = arith.constant 0 : index
    %6 = vector.load %arg3[%c0_3, %c0_4] : memref<24x32xf32, #tpu.memory_space<vmem>>, vector<24x32xf32>
    %cst = arith.constant dense<0.000000e+00> : vector<8x32xf32>
    %7 = tpu.matmul %5, %6, %cst {dimension_numbers = #tpu.dot_dimension_numbers<[1], [0], [0], [1], [0, 0, 1, 1], [], []>} : vector<8x24xf32>, vector<24x32xf32>, vector<8x32xf32> -> vector<8x32xf32>
    %c0_5 = arith.constant 0 : index
    %c0_6 = arith.constant 0 : index
    %8 = vector.load %arg4[%c0_5, %c0_6] : memref<1x32xf32, #tpu.memory_space<vmem>>, vector<1x32xf32>
    %9 = vector.broadcast %8 : vector<1x32xf32> to vector<8x32xf32>
    %10 = arith.addf %7, %9 : vector<8x32xf32>
    %11 = vector.extract_strided_slice %10 {offsets = [0, 0], sizes = [8, 16], strides = [1, 1]} : vector<8x32xf32> to vector<8x16xf32>
    %12 = math.tanh %11 : vector<8x16xf32>
    %13 = vector.extract_strided_slice %10 {offsets = [0, 16], sizes = [8, 16], strides = [1, 1]} : vector<8x32xf32> to vector<8x16xf32>
    %14 = arith.negf %13 : vector<8x16xf32>
    %15 = math.exp %14 : vector<8x16xf32>
    %cst_7 = arith.constant 1.000000e+00 : f32
    %16 = vector.broadcast %cst_7 : f32 to vector<8x16xf32>
    %17 = arith.addf %16, %15 : vector<8x16xf32>
    %18 = arith.divf %16, %17 : vector<8x16xf32>
    %19 = arith.mulf %12, %18 : vector<8x16xf32>
    %c0_8 = arith.constant 0 : index
    %c0_9 = arith.constant 0 : index
    %20 = vector.load %arg5[%c0_8, %c0_9] : memref<16x128xf32, #tpu.memory_space<vmem>>, vector<16x128xf32>
    %cst_10 = arith.constant dense<0.000000e+00> : vector<8x128xf32>
    %21 = tpu.matmul %19, %20, %cst_10 {dimension_numbers = #tpu.dot_dimension_numbers<[1], [0], [0], [1], [0, 0, 1, 1], [], []>} : vector<8x16xf32>, vector<16x128xf32>, vector<8x128xf32> -> vector<8x128xf32>
    %c0_11 = arith.constant 0 : index
    %c0_12 = arith.constant 0 : index
    %22 = vector.load %arg6[%c0_11, %c0_12] : memref<1x128xf32, #tpu.memory_space<vmem>>, vector<1x128xf32>
    %23 = vector.broadcast %22 : vector<1x128xf32> to vector<8x128xf32>
    %24 = arith.addf %21, %23 : vector<8x128xf32>
    %25 = vector.extract_strided_slice %1 {offsets = [1, 0], sizes = [8, 8], strides = [1, 1]} : vector<10x8xf32> to vector<8x8xf32>
    %cst_13 = arith.constant 0.000000e+00 : f32
    %26 = vector.broadcast %cst_13 : f32 to vector<8x120xf32>
    %27 = tpu.concatenate %25, %26 in 1 : vector<8x8xf32>, vector<8x120xf32> -> vector<8x128xf32>
    %28 = arith.addf %24, %27 : vector<8x128xf32>
    %c0_14 = arith.constant 0 : index
    %c0_15 = arith.constant 0 : index
    %c0_16 = arith.constant 0 : index
    %29 = vector.load %arg7[%c0_14, %c0_15, %c0_16] : memref<1x8x128xf32, #tpu.memory_space<vmem>>, vector<1x8x128xf32>
    %30 = vector.shape_cast %29 : vector<1x8x128xf32> to vector<8x128xf32>
    %31 = vector.shape_cast %28 : vector<8x128xf32> to vector<1x8x128xf32>
    tpu.vector_store %arg7[%c0_14, %c0_15, %c0_16], %31 {strides = array<i32>} : memref<1x8x128xf32, #tpu.memory_space<vmem>>, vector<1x8x128xf32>,
    return
  }
  func.func @transform_0(%arg0: i32, %arg1: i32) -> (i32, i32, i32, i32) {
    %c0_i32 = arith.constant 0 : i32
    %c0_i32_0 = arith.constant 0 : i32
    %c0_i32_1 = arith.constant 0 : i32
    return %arg0, %arg1, %c0_i32, %c0_i32_0 : i32, i32, i32, i32
  }
  func.func @transform_1(%arg0: i32, %arg1: i32) -> (i32, i32) {
    %c0_i32 = arith.constant 0 : i32
    %c0_i32_0 = arith.constant 0 : i32
    %c0_i32_1 = arith.constant 0 : i32
    return %c0_i32, %c0_i32_0 : i32, i32
  }
  func.func @transform_2(%arg0: i32, %arg1: i32) -> (i32, i32) {
    %c0_i32 = arith.constant 0 : i32
    %c0_i32_0 = arith.constant 0 : i32
    %c0_i32_1 = arith.constant 0 : i32
    return %c0_i32, %c0_i32_0 : i32, i32
  }
  func.func @transform_3(%arg0: i32, %arg1: i32) -> (i32, i32) {
    %c0_i32 = arith.constant 0 : i32
    %c0_i32_0 = arith.constant 0 : i32
    %c0_i32_1 = arith.constant 0 : i32
    return %c0_i32, %c0_i32_0 : i32, i32
  }
  func.func @transform_4(%arg0: i32, %arg1: i32) -> (i32, i32) {
    %c0_i32 = arith.constant 0 : i32
    %c0_i32_0 = arith.constant 0 : i32
    %c0_i32_1 = arith.constant 0 : i32
    return %c0_i32, %c0_i32_0 : i32, i32
  }
  func.func @transform_5(%arg0: i32, %arg1: i32) -> (i32, i32, i32) {
    %c0_i32 = arith.constant 0 : i32
    %c0_i32_0 = arith.constant 0 : i32
    return %arg0, %arg1, %c0_i32 : i32, i32, i32
  }
}

</mosaic_0001>

<bundles_post_ra>
// kernel: tpu_custom_call.1
= control target key start
LH: loop header
LB: loop body
LE: loop exit
PB: predicated region body
PF: predicated region fallthrough
CT: control target
= control target key end

     0   :  { %10 = vsyncpa [#allocation3], 0  ;;  %s987_s0 = inlined_call_operand.vmem [shape: f32[2,2,10,8], index: 0, kind: input, shape index: {}]   ;;  %s988_s1 = inlined_call_operand.vmem [shape: f32[24,32], index: 1, kind: input, shape index: {}]   ;;  %s989_s2 = inlined_call_operand.vmem [shape: f32[1,32], index: 2, kind: input, shape index: {}]   ;;  %s990_s3 = inlined_call_operand.vmem [shape: f32[16,128], index: 3, kind: input, shape index: {}]   ;;  %s991_s4 = inlined_call_operand.vmem [shape: f32[1,128], index: 4, kind: input, shape index: {}]   ;;  %s992_s5 = inlined_call_operand.hbm [shape: f32[2,16,128], index: 5, kind: output, shape index: {}]  }
   0x1   :  { %12 = vsyncpa [#allocation3 + $0x1], 0  ;;  %s822_s18 = smov 0   ;;  %s824_s19 = smov 0  }
   0x2   :  { %s826_s20 = smov 0   ;;  %s828_s21 = smov 0  }
   0x3   :  { %s830_s22 = smov 0   ;;  %s832_s23 = smov 0  }
   0x4   :  { %s834_s24 = smov 0   ;;  %s836_s25 = smov 0  }
   0x5 LB: > { %s558_s26 = sadd.s32 4294967295, %s783_s25   ;;  %s559_s27 = sadd.s32 4294967294, %s783_s25   ;;  %s783_s25 = sphi %s836_s25, %s18_s25   ;;  %s779_s24 = sphi %s834_s24, %s1001_s24   ;;  %s775_s23 = sphi %s832_s23, %s1000_s23   ;;  %s771_s22 = sphi %s830_s22, %s999_s22   ;;  %s767_s21 = sphi %s828_s21, %s998_s21   ;;  %s763_s20 = sphi %s826_s20, %s997_s20   ;;  %s759_s19 = sphi %s824_s19, %s996_s19   ;;  %s755_s18 = sphi %s822_s18, %s995_s18  }
   0x6   : > { %s27_s28 = sadd.s32 1, %s775_s23  ;;  %s30_s29 = sadd.s32 1, %s779_s24 }
   0x7   : > { %p28_p0 = scmp.ge.s32.totalorder %s27_s28, 2  ;;  %p161_p1 = scmp.ne.s32.totalorder %s763_s20, %s759_s19 }
   0x8   : > { %p162_p2 = scmp.eq.s32.totalorder %s558_s26, 3  ;;  %p167_p5 = scmp.ne.s32.totalorder %s759_s19, %s755_s18 }
   0x9   : > { %s1003_s28 = smov (%p28_p0, %s27_s28), 0  ;;  %s1005_s29 = smov (!%p28_p0, %s30_s29), %s779_s24 }
   0xa   : > { %s147_s30 = ssub.s32 %s775_s23, %s1003_s28  ;;  %p873_p3 = por %p162_p2, %p161_p1 }
   0xb   : > { %p32_p4 = scmp.ge.s32.totalorder %s1005_s29, 2  ;;  %p168_p6 = scmp.eq.s32.totalorder %s559_s27, 3 }
   0xc   : > { %p562_p7 = scmp.ge.s32.totalorder %s783_s25, 1  ;;  %p210_p9 = scmp.lt.s32.totalorder %s783_s25, 5 }
   0xd   : > { %s1007_s29 = smov (%p32_p4, %s1005_s29), 0  ;;  %p882_p8 = por %p168_p6, %p167_p5 }
   0xe   : > { %s146_s8 = ssub.s32 %s779_s24, %s1007_s29  ;;  %s151_s9 = sadd.s32 1, %s763_s20 }
   0xf   : > { %s148_s10 = sor.u32 %s147_s30, %s146_s8  ;;  %p211_p10 = pnand %p562_p7, %p210_p9 }
  0x10   : > { %p149_p11 = scmp.eq.s32.totalorder %s148_s10, 0  ;;  %p242_p12 = scmp.lt.s32.totalorder (!%p211_p10), %s771_s22, 1  ;;  %v785_v0 = vmov (!%p211_p10), 0.0|0.0   ;;  %v273_v1 = vld [vmem:[%s988_s1] sm:$0xff] (!%p211_p10)  ;;  %v274_v2 = vld [vmem:[%s988_s1 + $0x8] sm:$0xff] (!%p211_p10)  ;;  %vm786_vm0 = vmmov (!%p211_p10), 0  }
  0x11   : > { %214 = sbr.rel (%p211_p10) target bundleno = 742 (0x2e6), region = 40  ;;  %p244_p13 = scmp.lt.s32.totalorder (!%p211_p10), %s767_s21, 1  ;;  %600 = vmatprep.subr.bf16.mxu0 (!%p211_p10), %v785_v0  ;;  %603 = vmatprep.subr.bf16.mxu1 (!%p211_p10), %v785_v0  ;;  %v601_v3 = vpack.c.bf16 (!%p211_p10), %v274_v2, %v273_v1  ;;  %v787_v4 = vmov (!%p211_p10), 0.0   ;;  %v275_v5 = vld [vmem:[%s988_s1 + $0x10] sm:$0xff] (!%p211_p10)  ;;  %vm255_vm1 = vcmask (!%p211_p10), 1046528   ;;  %vm262_vm2 = vcmask (!%p211_p10), 1045504  }
  0x12   : > { %s891_s11 = scalar_select %p149_p11, %s763_s20, %s151_s9  }
  0x13   : > { %602 = vmatpush3.bf16.msra.mxu0 (!%p211_p10), %v601_v3  ;;  %590 = vmatprep.mubr.msk.f32.mxu0 (!%p211_p10), %vm786_vm0, %v787_v4  ;;  %s788_s15 = smov (!%p211_p10), 8   ;;  %vm269_vm3 = vcmask (!%p211_p10), 64512   ;;  %vm271_vm4 = vcmask (!%p211_p10), 130048   ;;  %vm283_vm5 = vcmask (!%p211_p10), 195584   ;;  %v369_v18 = vld [vmem:[%s990_s3] sm:$0xff] (!%p211_p10)  ;;  %v370_v19 = vld [vmem:[%s990_s3 + $0x8] sm:$0xff] (!%p211_p10) }
  0x14   : > { %588 = vmatprep.subr.mxu0 (!%p211_p10), %v787_v4  ;;  %597 = vmatprep.mubr.msk.f32.mxu1 (!%p211_p10), %vm786_vm0, %v787_v4  ;;  %v604_v20 = vpack.c.bf16 (!%p211_p10), %v370_v19, %v369_v18  ;;  %v567_v21 = vld [vmem:[%s989_s2] ss:$0 sm:$0xff] (!%p211_p10)  ;;  %s239_s12 = sand.u32 (!%p211_p10), 1, %s759_s19  }
  0x15   : > { %s563_s13 = sshll.u32 (!%p211_p10), %s239_s12, 3  ;;  %v570_v36 = vld [vmem:[%s991_s4] ss:$0 sm:$0xff] (!%p211_p10) }
  0x16   : > { %605 = vmatpush3.bf16.msra.mxu1 (!%p211_p10), %v604_v20 }
  0x17   : > { %589 = vmatpush3.msra.mxu0 (!%p211_p10), %v275_v5 }
  0x18   : > { %s243_s16 = scalar_select %p242_p12, %s771_s22, 1 }
  0x19   : > { %s245_s17 = scalar_select %p244_p13, %s767_s21, 1 }
  0x1a   : > { %s565_s26 = sshll.u32 %s243_s16, 2  ;;  %s789_s16 = smov 16  }
  0x1b   : > { %s564_s27 = sshll.u32 %s245_s17, 1 }
  0x1c   : > { %s248_s9 = sadd.s32 %s565_s26, %s564_s27  ;;  %s241_s27 = scalar_lea.vmem [#allocation2], %s563_s13 }
  0x1d   : > { %s566_s10 = sshll.u32 %s248_s9, 3  ;;  %s477_s30 = sshll.u32 %s241_s27, 4  ;;  %s936_s30 = int_to_ptr.vmem [resolvable:$true] %s477_s30 }
  0x1e   : > { %s250_s14 = scalar_lea.vmem %s987_s0, %s566_s10  ;;  %s790_s10 = smov 112  }
  0x1f   : > { %v251_v6 = vld [vmem:[%s250_s14] sm:$0xff]  ;;  %v252_v7 = vld [vmem:[%s250_s14 + $0x8] sm:$0x3]  ;;  %s573_s14 = sshll.u32 %s771_s22, 1  ;;  %s791_s13 = smov [#allocation2]  }
  0x20   : > { %v256_v8 = vrot.slane %v251_v6, 1  ;;  %v257_v9 = vrot.slane %v252_v7, 1  ;;  %v263_v10 = vrot.slane %v251_v6, 2  ;;  %v264_v11 = vrot.slane %v252_v7, 2 }
  0x21   : > { %v451_v32 = vsel %vm269_vm3, %v251_v6, 0.0  ;;  %v452_v33 = vsel %vm269_vm3, %v252_v7, 0.0 }
  0x22   : > { %v258_v12 = vsel %vm255_vm1, %v256_v8, %v257_v9  ;;  %v265_v13 = vsel %vm262_vm2, %v263_v10, %v264_v11  ;;  %v455_v34 = vrot.slane %v451_v32, 1  ;;  %v456_v35 = vrot.slane %v452_v33, 1 }
  0x23   : > { %259 = vrot.lane.b32.xlu0 %v258_v12, %s788_s15  ;;  %s473_s15 = sadd.s32 %s767_s21, %s573_s14  ;;  %s462_s21 = scalar_lea.sflag [#allocation3], %s239_s12 }
  0x24   : > { %v457_v38 = vsel %vm255_vm1, %v455_v34, %v456_v35  ;;  %s574_s26 = sshll.u32 %s473_s15, 7  ;;  %s693_s14 = sshll.u32 %s791_s13, 4  ;;  %s694_s14 = int_to_ptr.vmem [resolvable:$false] %s693_s14 }
  0x25   : > { %s934_s22 = scalar_lea.hbm %s992_s5, %s574_s26  ;;  %s695_s15 = scalar_lea.vmem %s694_s14, 256 }
  0x26   : > { %p696_p4 = scmp.lt.s32.totalorder %s936_s30, %s694_s14 }
  0x27   : > { %266 = vrot.lane.b32.xlu0 %v265_v13, %s789_s16 }
  0x95   : > { %v260_v14 = vpop.permute.xlu0 %259 }
  0x96   : > { %v270_v15 = vsel %vm269_vm3, %v251_v6, %v260_v14 }
  0x99   : > { %v267_v16 = vpop.permute.xlu0 %266 }
  0x9a   : > { %v272_v17 = vsel %vm271_vm4, %v270_v15, %v267_v16 }
  0x9b   : > { %591 = vmatmul.mubr.msk.f32.vlgmr.msra.gmra.mrb[0].mxu0 %vm283_vm5, %v272_v17 }
 0x16e   : > { %v353_v22 = vpop.f32.mrb[0].mxu0 }
 0x16f   : > { %v354_v23 = vadd.f32 %v567_v21, %v353_v22  ;;  %v592_v24 = vpop.f32.mrb[1].mxu0 }
 0x171   : > { %v569_v25 = vmul.f32 -1.442695, %v354_v23 }
 0x173   : > { %683 = vpow2.f32 %v569_v25 }
 0x17d   : > { %v684_v26 = vpop.eup %683 }
 0x17e   : > { %v361_v27 = vadd.f32 1.0, %v684_v26 }
 0x180   : > { %685 = vrcp.f32 %v361_v27 }
 0x181   : > { %687 = vtanh.f32 %v354_v23 }
 0x18a   : > { %v686_v28 = vpop.eup %685 }
 0x18b   : > { %365 = vrot.lane.b32.xlu1 %v686_v28, %s790_s10  ;;  %v688_v29 = vpop.eup %687  ;;  %s689_s10 = scalar_lea.vmem %s936_s30, 128 }
 0x18c   : > { %p690_p0 = scmp.ne.s32.totalorder %s936_s30, %s689_s10  ;;  %p697_p5 = scmp.lt.s32.totalorder %s695_s15, %s689_s10 }
 0x18e   : > { %p691_p1 = pnand %p690_p0, %p873_p3  ;;  %p698_p6 = por %p697_p5, %p696_p4 }
 0x190   : > { %p692_p2 = pneg %p691_p1 }
 0x192   : > { %p699_p7 = pnand %p698_p6, %p692_p2 }
 0x1fd   : > { %v366_v30 = vpop.permute.xlu1 %365 }
 0x1fe   : > { %v368_v31 = vmul.f32 %v688_v29, %v366_v30 }
 0x200   : > { %598 = vmatmul.mubr.msk.f32.vlgmr.msra.gmra.mrb[0].mxu1 %vm271_vm4, %v368_v31 }
 0x2d3   : > { %v447_v37 = vpop.f32.mrb[0].mxu1 }
 0x2d4   : > { %v448_v39 = vadd.f32 %v570_v36, %v447_v37  ;;  %v599_v40 = vpop.f32.mrb[1].mxu1 }
 0x2d6   : > { %v459_v41 = vadd.f32 %v457_v38, %v448_v39 }
 0x2d8   : > { %460 = vst [vmem:[%s241_s27] sm:$0xff] %v459_v41 }
 0x2d9   : > { %702 = shalt.err (!%p699_p7)
}
 0x2da   : > { %s703_s12 = scalar_lea.hbm %s934_s22, 128  ;;  %s707_s26 = scalar_lea.hbm %s992_s5, 512 }
 0x2db   : > { %p704_p9 = scmp.ne.s32.totalorder %s934_s22, %s703_s12  ;;  %p708_p12 = scmp.lt.u32.totalorder %s934_s22, %s992_s5 }
 0x2dc   : > { %p709_p13 = scmp.lt.u32.totalorder %s707_s26, %s703_s12  ;;  %p711_p1 = scmp.lt.u32.totalorder %s703_s12, %s934_s22 }
 0x2dd   : > { %p705_p10 = pnand %p704_p9, %p873_p3 }
 0x2de   : > { %p710_p0 = por %p709_p13, %p708_p12 }
 0x2df   : > { %p706_p11 = pneg %p705_p10 }
 0x2e0   : > { %p712_p2 = por %p711_p1, %p710_p0 }
 0x2e2   : > { %p713_p4 = pnand %p712_p2, %p706_p11 }
 0x2e4   : > { %716 = shalt.err (!%p713_p4)
}
 0x2e5   : > { %606 = dma.vmem_to_hbm [thread:$0]  (%p873_p3), %s936_s30, 128, %s934_s22, %s462_s21  }
 0x2e6 PF: > { %p612_p5 = scmp.ge.s32.totalorder %s783_s25, 2  ;;  %s489_s9 = sand.u32 1, %s755_s18  }
 0x2e7   : > { %s490_s10 = scalar_lea.sflag [#allocation3], %s489_s9 }
 0x2e8   : > { %p609_p6 = pnand %p612_p5, %p882_p8 }
 0x2ea   : > { %750 = dma.done.wait (!%p609_p6), %s490_s10, 128  }
 0x2eb   : > { %752 = vsyncadd (!%p609_p6), %s490_s10, 4294967168  ;;  %s18_s25 = sadd.s32 1, %s783_s25   ;;  %s995_s18 = smov %s759_s19 }
 0x2ec   : > { %p15_p7 = scmp.ge.s32.totalorder %s18_s25, 6   ;;  %s996_s19 = smov %s763_s20 }
 0x2ed   : > { %s997_s20 = smov %s891_s11  ;;  %s998_s21 = smov %s775_s23 }
 0x2ee   : > { %s999_s22 = smov %s779_s24  ;;  %s1000_s23 = smov %s1003_s28 }
 0x2ef   : > { %s1001_s24 = smov %s1007_s29  ;;  %17 = sbr.rel (!%p15_p7) target bundleno = 5 (0x5), region = 75 }
 0x2f6   :  { %495 = vsyncpa [#allocation3], 1 }
 0x2f7   :  { %497 = vsyncpa [#allocation3 + $0x1], 1 }

</bundles_post_ra>
